<compile_context>
chip_gen: v6e
topology: v6e:2x2x1
jax: 0.10.0
libtpu: 0.0.40
codegen_flags: <defaults>
</compile_context>

<pallas_src>
import math
import functools

import jax
import jax.numpy as jnp
from jax.experimental import pallas as pl
from jax.experimental.pallas import tpu as pltpu


# ----------------------------------------------------------------------------
# Helpers
# ----------------------------------------------------------------------------
def _invariant_spec(block_shape, index_map):
    """BlockSpec for a grid-invariant operand: single-buffered if supported
    (halves its VMEM footprint vs. default double-buffering)."""
    try:
        return pl.BlockSpec(block_shape, index_map, pipeline_mode=pl.Buffered(1))
    except (AttributeError, TypeError, ValueError):
        return pl.BlockSpec(block_shape, index_map)


def _vmem_limit_bytes():
    """Generation-aware VMEM budget: physical capacity minus headroom.
    v5e/v6e (128 MiB) -> ~112 MiB, v7x (64 MiB) -> 48 MiB."""
    try:
        cap = getattr(pltpu.get_tpu_info(), "vmem_capacity_bytes", None)
        if cap is None:
            return None
        return min(max(int(cap) - (16 << 20), 32 << 20), 112 << 20)
    except Exception:
        return None


def _compiler_params(semantics, vmem_limit):
    kwargs = dict(dimension_semantics=semantics)
    if vmem_limit is not None:
        kwargs["vmem_limit_bytes"] = int(vmem_limit)
    return pltpu.CompilerParams(**kwargs)


def _pick_tile(n, target):
    """Largest divisor of n that is <= target and a multiple of 128
    (preferred) or 8 (fallback); otherwise n itself (a full-dim block is
    always layout-legal)."""
    target = max(1, min(n, target))
    for quantum in (128, 8):
        t = (target // quantum) * quantum
        while t >= quantum:
            if n % t == 0:
                return t
            t -= quantum
    # TODO(synk): pad / mask a tail tile for sequence lengths that are not a
    # multiple of 8 instead of falling back to a full-length block.
    return n


# ----------------------------------------------------------------------------
# Kernel 1: fused QKV projection — one wide matmul per x tile.
# grid = (B, S // ts)
# ----------------------------------------------------------------------------
def qkv_proj_kernel(x_ref, w_ref, b_ref, q_ref, k_ref, v_ref, *,
                    num_kv_heads, group_size, head_dim, embed_dim, kv_dim,
                    scale, flat_layout):
    x = x_ref[...]                                                  # (ts, E)
    # Single long-N MXU pass for Q|K|V.
    qkv = jnp.dot(x, w_ref[...], preferred_element_type=jnp.float32) + b_ref[...]
    E, KV, D = embed_dim, kv_dim, head_dim
    q = qkv[:, :E] * scale                    # fold 1/sqrt(D) into Q once
    k = qkv[:, E:E + KV]
    v = qkv[:, E + KV:]
    if flat_layout:
        # head_dim % 128 == 0: full-width, unmasked lane-dense stores.
        q_ref[...] = q.astype(q_ref.dtype)
        k_ref[...] = k.astype(k_ref.dtype)
        v_ref[...] = v.astype(v_ref.dtype)
    else:
        # head_dim < 128: KV-head-grouped 4-D layout; "last dim == full dim"
        # keeps the attention kernel's BlockSpecs (8,128)-legal.
        # Block grouping (query head h uses kv head h // group_size) matches
        # torch.repeat_interleave — do NOT change to interleaved grouping.
        gw = group_size * D
        for g in range(num_kv_heads):
            q_ref[g] = q[:, g * gw:(g + 1) * gw].astype(q_ref.dtype)
            k_ref[g] = k[:, g * D:(g + 1) * D].astype(k_ref.dtype)
            v_ref[g] = v[:, g * D:(g + 1) * D].astype(v_ref.dtype)


# ----------------------------------------------------------------------------
# Kernel 2: flash-style GQA attention + fused output projection.
# grid = (batch, q_tiles, num_kv_heads, kv_tiles)
# ----------------------------------------------------------------------------
def flash_gqa_kernel(q_ref, k_ref, v_ref, wo_ref, bo_ref, out_ref,
                     m_sc, l_sc, acc_sc, og_sc, oacc_sc, *,
                     group_size, head_dim, group_width, recip_approx,
                     exp_dtype):
    g = pl.program_id(2)
    ki = pl.program_id(3)
    n_g = pl.num_programs(2)
    n_k = pl.num_programs(3)
    D = head_dim
    gw = group_width

    # Fused output-projection accumulator: init once per (batch, q-tile).
    @pl.when((g == 0) & (ki == 0))
    def _init_out():
        oacc_sc[...] = jnp.zeros_like(oacc_sc)

    # Online-softmax stats: re-init for every KV-head group.
    @pl.when(ki == 0)
    def _init_stats():
        m_sc[...] = jnp.full_like(m_sc, -jnp.inf)
        l_sc[...] = jnp.zeros_like(l_sc)
        acc_sc[...] = jnp.zeros_like(acc_sc)

    q = q_ref[...]          # (tq, gw), already scaled by 1/sqrt(D)
    k = k_ref[...]          # (tk, D)
    v = v_ref[...]          # (tk, D)

    # All query heads of this group share the same K/V tile (loaded once).
    for h in range(group_size):
        qh = q[:, h * D:(h + 1) * D]                                  # (tq, D)
        # QK^T without an explicit transpose: contract the last dims.
        s = jax.lax.dot_general(qh, k, (((1,), (1,)), ((), ())),
                                preferred_element_type=jnp.float32)   # (tq, tk)
        m_prev = m_sc[h]
        m_new = jnp.maximum(m_prev, jnp.max(s, axis=-1, keepdims=True))
        alpha = jnp.exp2(m_prev - m_new)          # softermax: base-2 softmax
        p = jnp.exp2((s - m_new).astype(exp_dtype))                   # (tq, tk)
        l_sc[h] = alpha * l_sc[h] + jnp.sum(p.astype(jnp.float32),
                                            axis=-1, keepdims=True)
        acc_sc[h] = alpha * acc_sc[h] + jnp.dot(
            p.astype(v.dtype), v, preferred_element_type=jnp.float32)  # (tq, D)
        m_sc[h] = m_new

    # Last KV tile of this group: normalize, assemble the group's heads into a
    # contiguous (tq, gw) slab, and fold them into the output projection with
    # ONE matmul of contraction depth gw (better MXU fill, single RMW of the
    # (tq, E) accumulator instead of group_size of them).
    @pl.when(ki == n_k - 1)
    def _project():
        for h in range(group_size):
            inv = pl.reciprocal(l_sc[h], approx=recip_approx)          # (tq, 1)
            og_sc[:, h * D:(h + 1) * D] = (acc_sc[h] * inv).astype(og_sc.dtype)
        # Wo stays fully resident (constant index_map, single-buffered); slice
        # only this group's rows.
        row0 = pl.multiple_of(g * gw, gw)
        w_g = wo_ref[pl.ds(row0, gw), :]                               # (gw, E)
        oacc_sc[...] += jnp.dot(og_sc[...], w_g,
                                preferred_element_type=jnp.float32)

    # After the last KV head: add the bias once and write the output tile.
    @pl.when((g == n_g - 1) & (ki == n_k - 1))
    def _finalize():
        out_ref[...] = (oacc_sc[...] + bo_ref[...]).astype(out_ref.dtype)


# ----------------------------------------------------------------------------
# Wrapper
# ----------------------------------------------------------------------------
def gqa_forward(x, params, *, num_heads, num_kv_heads,
                proj_tile=512, q_tile=None, kv_tile=512,
                compute_dtype=jnp.bfloat16, exp2_in_compute_dtype=False):
    """GQA forward. `exp2_in_compute_dtype=True` computes the softmax exp2 in
    the compute dtype (worthwhile on v6e/v7x when head_dim <= 64; keep False
    on v5e, which has no bf16 EUP)."""
    B, S, E = x.shape
    assert E % num_heads == 0 and num_heads % num_kv_heads == 0
    D = E // num_heads
    gs = num_heads // num_kv_heads
    KV = E // gs
    gw = gs * D
    scale = 1.0 / math.sqrt(D)
    flat = (D % 128 == 0)                    # lane-dense layout when legal

    wq, bq, wk, bk, wv, bv, wo, bo = params

    vmem_limit = _vmem_limit_bytes()
    if q_tile is None:
        # Bigger q-tiles cut the K/V HBM re-read factor (S/tq); use them where
        # VMEM allows (v5e/v6e: 128 MiB). v7x (64 MiB) keeps the smaller tile.
        q_tile = 512 if (vmem_limit or 0) >= (96 << 20) else 256

    ts = _pick_tile(S, proj_tile)
    tq = _pick_tile(S, q_tile)
    tk = _pick_tile(S, kv_tile)
    # v7x has 2 TensorCores; the "parallel" grid axes (B, S//tq) are what gets
    # sharded across them, so keep at least 2 parallel tiles when possible.
    if B * (S // tq) < 2 and tq % 16 == 0 and S % (tq // 2) == 0:
        tq //= 2

    # bf16 operands for the MXU, f32 biases / accumulators / softmax stats.
    x_c = x.astype(compute_dtype)
    w_qkv = jnp.concatenate([wq, wk, wv], axis=1).astype(compute_dtype)  # (E, E+2KV)
    b_qkv = jnp.concatenate([bq, bk, bv], axis=1).astype(jnp.float32)    # (1, E+2KV)
    wo_c = wo.astype(compute_dtype)
    bo_f = bo.astype(jnp.float32)

    exp_dtype = compute_dtype if exp2_in_compute_dtype else jnp.float32
    recip_approx = (compute_dtype != jnp.float32)

    # ---- Kernel 1: fused QKV projection ------------------------------------
    qkv_kernel = functools.partial(
        qkv_proj_kernel, num_kv_heads=num_kv_heads, group_size=gs, head_dim=D,
        embed_dim=E, kv_dim=KV, scale=scale, flat_layout=flat)

    if flat:
        qkv_out_shape = (
            jax.ShapeDtypeStruct((B, S, E), compute_dtype),
            jax.ShapeDtypeStruct((B, S, KV), compute_dtype),
            jax.ShapeDtypeStruct((B, S, KV), compute_dtype),
        )
        qkv_out_specs = [
            pl.BlockSpec((None, ts, E), lambda b, s: (b, s, 0)),
            pl.BlockSpec((None, ts, KV), lambda b, s: (b, s, 0)),
            pl.BlockSpec((None, ts, KV), lambda b, s: (b, s, 0)),
        ]
    else:
        qkv_out_shape = (
            jax.ShapeDtypeStruct((B, num_kv_heads, S, gw), compute_dtype),
            jax.ShapeDtypeStruct((B, num_kv_heads, S, D), compute_dtype),
            jax.ShapeDtypeStruct((B, num_kv_heads, S, D), compute_dtype),
        )
        qkv_out_specs = [
            pl.BlockSpec((None, num_kv_heads, ts, gw), lambda b, s: (b, 0, s, 0)),
            pl.BlockSpec((None, num_kv_heads, ts, D), lambda b, s: (b, 0, s, 0)),
            pl.BlockSpec((None, num_kv_heads, ts, D), lambda b, s: (b, 0, s, 0)),
        ]

    # TODO(synk): for very large E (>= ~4096 on v7x) tile kernel 1 over the
    # output-feature dim instead of holding the whole (E, E+2*KV) weight.
    q_hs, k_hs, v_hs = pl.pallas_call(
        qkv_kernel,
        out_shape=qkv_out_shape,
        grid_spec=pltpu.PrefetchScalarGridSpec(
            num_scalar_prefetch=0,
            grid=(B, S // ts),
            in_specs=[
                pl.BlockSpec((None, ts, E), lambda b, s: (b, s, 0)),     # x tile
                _invariant_spec((E, E + 2 * KV), lambda b, s: (0, 0)),   # W_qkv
                _invariant_spec((1, E + 2 * KV), lambda b, s: (0, 0)),   # b_qkv
            ],
            out_specs=qkv_out_specs,
        ),
        compiler_params=_compiler_params(("parallel", "parallel"), vmem_limit),
    )(x_c, w_qkv, b_qkv)

    # ---- Kernel 2: flash GQA attention + fused output projection -----------
    attn_kernel = functools.partial(
        flash_gqa_kernel, group_size=gs, head_dim=D, group_width=gw,
        recip_approx=recip_approx, exp_dtype=exp_dtype)

    if flat:
        q_spec = pl.BlockSpec((None, tq, gw), lambda b, qi, g, ki: (b, qi, g))
        k_spec = pl.BlockSpec((None, tk, D), lambda b, qi, g, ki: (b, ki, g))
        v_spec = pl.BlockSpec((None, tk, D), lambda b, qi, g, ki: (b, ki, g))
    else:
        q_spec = pl.BlockSpec((None, None, tq, gw), lambda b, qi, g, ki: (b, g, qi, 0))
        k_spec = pl.BlockSpec((None, None, tk, D), lambda b, qi, g, ki: (b, g, ki, 0))
        v_spec = pl.BlockSpec((None, None, tk, D), lambda b, qi, g, ki: (b, g, ki, 0))

    # TODO(synk): on v7x with E >= ~4096, unfuse the output projection into a
    # separate kernel / XLA matmul instead of keeping Wo resident.
    out = pl.pallas_call(
        attn_kernel,
        out_shape=jax.ShapeDtypeStruct((B, S, E), x.dtype),
        grid_spec=pltpu.PrefetchScalarGridSpec(
            num_scalar_prefetch=0,
            grid=(B, S // tq, num_kv_heads, S // tk),
            in_specs=[
                q_spec, k_spec, v_spec,
                _invariant_spec((E, E), lambda b, qi, g, ki: (0, 0)),   # Wo (resident)
                _invariant_spec((1, E), lambda b, qi, g, ki: (0, 0)),   # bo
            ],
            out_specs=pl.BlockSpec((None, tq, E), lambda b, qi, g, ki: (b, qi, 0)),
            scratch_shapes=[
                pltpu.VMEM((gs, tq, 1), jnp.float32),    # m (running max, base-2)
                pltpu.VMEM((gs, tq, 1), jnp.float32),    # l (running denom)
                pltpu.VMEM((gs, tq, D), jnp.float32),    # unnormalized PV acc
                pltpu.VMEM((tq, gw), compute_dtype),     # normalized group output
                pltpu.VMEM((tq, E), jnp.float32),        # fused Wo accumulator
            ],
        ),
        # NOTE: (g, ki) must remain the two innermost axes and "arbitrary";
        # the scratch accumulators depend on this iteration order.
        compiler_params=_compiler_params(
            ("parallel", "parallel", "arbitrary", "arbitrary"), vmem_limit),
    )(q_hs, k_hs, v_hs, wo_c, bo_f)

    return out


# ----------------------------------------------------------------------------
# Params + pure-JAX reference (mirrors the PyTorch module)
# ----------------------------------------------------------------------------
def init_params(key, embed_dim, num_heads, num_kv_heads, dtype=jnp.float32):
    """Deterministic synthetic params. Weights are (in, out) == PyTorch W.T."""
    kv_dim = embed_dim // (num_heads // num_kv_heads)
    ks = jax.random.split(key, 8)
    s = 1.0 / math.sqrt(embed_dim)
    wq = jax.random.uniform(ks[0], (embed_dim, embed_dim), dtype, -s, s)
    bq = jax.random.uniform(ks[1], (1, embed_dim), dtype, -s, s)
    wk = jax.random.uniform(ks[2], (embed_dim, kv_dim), dtype, -s, s)
    bk = jax.random.uniform(ks[3], (1, kv_dim), dtype, -s, s)
    wv = jax.random.uniform(ks[4], (embed_dim, kv_dim), dtype, -s, s)
    bv = jax.random.uniform(ks[5], (1, kv_dim), dtype, -s, s)
    wo = jax.random.uniform(ks[6], (embed_dim, embed_dim), dtype, -s, s)
    bo = jax.random.uniform(ks[7], (1, embed_dim), dtype, -s, s)
    return (wq, bq, wk, bk, wv, bv, wo, bo)


def gqa_reference(x, params, *, num_heads, num_kv_heads):
    wq, bq, wk, bk, wv, bv, wo, bo = params
    B, S, E = x.shape
    D = E // num_heads
    gs = num_heads // num_kv_heads

    q = (x @ wq + bq).reshape(B, S, num_heads, D).transpose(0, 2, 1, 3)
    k = (x @ wk + bk).reshape(B, S, num_kv_heads, D).transpose(0, 2, 1, 3)
    v = (x @ wv + bv).reshape(B, S, num_kv_heads, D).transpose(0, 2, 1, 3)

    k = jnp.repeat(k, gs, axis=1)        # repeat_kv == repeat_interleave
    v = jnp.repeat(v, gs, axis=1)

    scores = jnp.einsum('bhqd,bhkd->bhqk', q, k) / math.sqrt(D)
    m = jnp.max(scores, axis=-1, keepdims=True)
    p = jnp.exp2(scores - m)             # softermax: base-2 softmax
    w = p / jnp.sum(p, axis=-1, keepdims=True)
    attn = jnp.einsum('bhqk,bhkd->bhqd', w, v)
    attn = attn.transpose(0, 2, 1, 3).reshape(B, S, E)
    return attn @ wo + bo


if __name__ == "__main__":
    key = jax.random.PRNGKey(0)
    kx, kp, kx2, kp2 = jax.random.split(key, 4)

    # --- Test 1: small config (head_dim=8 -> grouped 4-D layout path) -------
    B, S, E = 2, 8, 32
    num_heads, num_kv_heads = 4, 2
    x = jax.random.normal(kx, (B, S, E), jnp.float32)
    params = init_params(kp, E, num_heads, num_kv_heads)

    ref = gqa_reference(x, params, num_heads=num_heads, num_kv_heads=num_kv_heads)
    ref_norm = float(jnp.linalg.norm(ref))

    out_f32 = jax.block_until_ready(
        gqa_forward(x, params, num_heads=num_heads, num_kv_heads=num_kv_heads,
                    compute_dtype=jnp.float32))
    err_f32 = float(jnp.linalg.norm(out_f32 - ref)) / ref_norm
    assert err_f32 < 1e-3, f"f32 path rel-L2 error too high: {err_f32}"

    out_bf16 = jax.block_until_ready(
        gqa_forward(x, params, num_heads=num_heads, num_kv_heads=num_kv_heads,
                    compute_dtype=jnp.bfloat16))
    err_bf16 = float(jnp.linalg.norm(out_bf16.astype(jnp.float32) - ref)) / ref_norm
    assert err_bf16 < 5e-2, f"bf16 path rel-L2 error too high: {err_bf16}"

    # --- Test 2: head_dim=128 -> flat lane-dense layout, multi-tile grids ---
    B2, S2, E2 = 1, 512, 512
    nh2, nkv2 = 4, 2
    x2 = jax.random.normal(kx2, (B2, S2, E2), jnp.float32)
    params2 = init_params(kp2, E2, nh2, nkv2)
    ref2 = gqa_reference(x2, params2, num_heads=nh2, num_kv_heads=nkv2)
    out2 = jax.block_until_ready(
        gqa_forward(x2, params2, num_heads=nh2, num_kv_heads=nkv2,
                    proj_tile=128, q_tile=128, kv_tile=128,
                    compute_dtype=jnp.bfloat16))
    err2 = (float(jnp.linalg.norm(out2.astype(jnp.float32) - ref2))
            / float(jnp.linalg.norm(ref2)))
    assert err2 < 5e-2, f"flat-layout bf16 rel-L2 error too high: {err2}"

    print("KERNEL_OK")
</pallas_src>

<mosaic_0001>
module attributes {stable_mosaic.version = 11 : i64} {
  func.func @qkv_proj_kernel(%arg0: i32, %arg1: i32, %arg2: memref<1x8x32xf32, #tpu.memory_space<vmem>>, %arg3: memref<32x64xf32, #tpu.memory_space<vmem>>, %arg4: memref<1x64xf32, #tpu.memory_space<vmem>>, %arg5: memref<1x2x8x16xf32, #tpu.memory_space<vmem>>, %arg6: memref<1x2x8x8xf32, #tpu.memory_space<vmem>>, %arg7: memref<1x2x8x8xf32, #tpu.memory_space<vmem>>) attributes {dimension_semantics = [#tpu.dimension_semantics<parallel>, #tpu.dimension_semantics<parallel>], iteration_bounds = array<i64: 2, 1>, scalar_prefetch = 0 : i64, scratch_operands = 0 : i64, tpu.core_type = #tpu.core_type<tc>, window_params = [{transform_indices = @transform_0, window_bounds = array<i64: 1, 8, 32>}, {pipeline_mode = #tpu.pipeline_mode<synchronous>, transform_indices = @transform_1, window_bounds = array<i64: 32, 64>}, {pipeline_mode = #tpu.pipeline_mode<synchronous>, transform_indices = @transform_2, window_bounds = array<i64: 1, 64>}, {transform_indices = @transform_3, window_bounds = array<i64: 1, 2, 8, 16>}, {transform_indices = @transform_4, window_bounds = array<i64: 1, 2, 8, 8>}, {transform_indices = @transform_5, window_bounds = array<i64: 1, 2, 8, 8>}]} {
    %c0 = arith.constant 0 : index
    %c0_0 = arith.constant 0 : index
    %c0_1 = arith.constant 0 : index
    %0 = vector.load %arg2[%c0, %c0_0, %c0_1] : memref<1x8x32xf32, #tpu.memory_space<vmem>>, vector<1x8x32xf32>
    %1 = vector.shape_cast %0 : vector<1x8x32xf32> to vector<8x32xf32>
    %c0_2 = arith.constant 0 : index
    %c0_3 = arith.constant 0 : index
    %2 = vector.load %arg3[%c0_2, %c0_3] : memref<32x64xf32, #tpu.memory_space<vmem>>, vector<32x64xf32>
    %cst = arith.constant dense<0.000000e+00> : vector<8x64xf32>
    %3 = tpu.matmul %1, %2, %cst {dimension_numbers = #tpu.dot_dimension_numbers<[1], [0], [0], [1], [0, 0, 1, 1], [], []>} : vector<8x32xf32>, vector<32x64xf32>, vector<8x64xf32> -> vector<8x64xf32>
    %c0_4 = arith.constant 0 : index
    %c0_5 = arith.constant 0 : index
    %4 = vector.load %arg4[%c0_4, %c0_5] : memref<1x64xf32, #tpu.memory_space<vmem>>, vector<1x64xf32>
    %5 = vector.broadcast %4 : vector<1x64xf32> to vector<8x64xf32>
    %6 = arith.addf %3, %5 : vector<8x64xf32>
    %7 = vector.extract_strided_slice %6 {offsets = [0, 0], sizes = [8, 32], strides = [1, 1]} : vector<8x64xf32> to vector<8x32xf32>
    %cst_6 = arith.constant 0.353553385 : f32
    %8 = vector.broadcast %cst_6 : f32 to vector<8x32xf32>
    %9 = arith.mulf %7, %8 : vector<8x32xf32>
    %10 = vector.extract_strided_slice %6 {offsets = [0, 32], sizes = [8, 16], strides = [1, 1]} : vector<8x64xf32> to vector<8x16xf32>
    %11 = vector.extract_strided_slice %6 {offsets = [0, 48], sizes = [8, 16], strides = [1, 1]} : vector<8x64xf32> to vector<8x16xf32>
    %12 = vector.extract_strided_slice %9 {offsets = [0, 0], sizes = [8, 16], strides = [1, 1]} : vector<8x32xf32> to vector<8x16xf32>
    %c0_7 = arith.constant 0 : index
    %c0_8 = arith.constant 0 : index
    %c0_9 = arith.constant 0 : index
    %c0_10 = arith.constant 0 : index
    %13 = vector.load %arg5[%c0_7, %c0_8, %c0_9, %c0_10] : memref<1x2x8x16xf32, #tpu.memory_space<vmem>>, vector<1x1x8x16xf32>
    %14 = vector.shape_cast %13 : vector<1x1x8x16xf32> to vector<8x16xf32>
    %15 = vector.shape_cast %12 : vector<8x16xf32> to vector<1x1x8x16xf32>
    tpu.vector_store %arg5[%c0_7, %c0_8, %c0_9, %c0_10], %15 {strides = array<i32>} : memref<1x2x8x16xf32, #tpu.memory_space<vmem>>, vector<1x1x8x16xf32>,
    %16 = vector.extract_strided_slice %10 {offsets = [0, 0], sizes = [8, 8], strides = [1, 1]} : vector<8x16xf32> to vector<8x8xf32>
    %c0_11 = arith.constant 0 : index
    %c0_12 = arith.constant 0 : index
    %c0_13 = arith.constant 0 : index
    %c0_14 = arith.constant 0 : index
    %17 = vector.load %arg6[%c0_11, %c0_12, %c0_13, %c0_14] : memref<1x2x8x8xf32, #tpu.memory_space<vmem>>, vector<1x1x8x8xf32>
    %18 = vector.shape_cast %17 : vector<1x1x8x8xf32> to vector<8x8xf32>
    %19 = vector.shape_cast %16 : vector<8x8xf32> to vector<1x1x8x8xf32>
    tpu.vector_store %arg6[%c0_11, %c0_12, %c0_13, %c0_14], %19 {strides = array<i32>} : memref<1x2x8x8xf32, #tpu.memory_space<vmem>>, vector<1x1x8x8xf32>,
    %20 = vector.extract_strided_slice %11 {offsets = [0, 0], sizes = [8, 8], strides = [1, 1]} : vector<8x16xf32> to vector<8x8xf32>
    %c0_15 = arith.constant 0 : index
    %c0_16 = arith.constant 0 : index
    %c0_17 = arith.constant 0 : index
    %c0_18 = arith.constant 0 : index
    %21 = vector.load %arg7[%c0_15, %c0_16, %c0_17, %c0_18] : memref<1x2x8x8xf32, #tpu.memory_space<vmem>>, vector<1x1x8x8xf32>
    %22 = vector.shape_cast %21 : vector<1x1x8x8xf32> to vector<8x8xf32>
    %23 = vector.shape_cast %20 : vector<8x8xf32> to vector<1x1x8x8xf32>
    tpu.vector_store %arg7[%c0_15, %c0_16, %c0_17, %c0_18], %23 {strides = array<i32>} : memref<1x2x8x8xf32, #tpu.memory_space<vmem>>, vector<1x1x8x8xf32>,
    %24 = vector.extract_strided_slice %9 {offsets = [0, 16], sizes = [8, 16], strides = [1, 1]} : vector<8x32xf32> to vector<8x16xf32>
    %c0_19 = arith.constant 0 : index
    %c1 = arith.constant 1 : index
    %c0_20 = arith.constant 0 : index
    %c0_21 = arith.constant 0 : index
    %25 = vector.load %arg5[%c0_19, %c1, %c0_20, %c0_21] : memref<1x2x8x16xf32, #tpu.memory_space<vmem>>, vector<1x1x8x16xf32>
    %26 = vector.shape_cast %25 : vector<1x1x8x16xf32> to vector<8x16xf32>
    %27 = vector.shape_cast %24 : vector<8x16xf32> to vector<1x1x8x16xf32>
    tpu.vector_store %arg5[%c0_19, %c1, %c0_20, %c0_21], %27 {strides = array<i32>} : memref<1x2x8x16xf32, #tpu.memory_space<vmem>>, vector<1x1x8x16xf32>,
    %28 = vector.extract_strided_slice %10 {offsets = [0, 8], sizes = [8, 8], strides = [1, 1]} : vector<8x16xf32> to vector<8x8xf32>
    %c0_22 = arith.constant 0 : index
    %c1_23 = arith.constant 1 : index
    %c0_24 = arith.constant 0 : index
    %c0_25 = arith.constant 0 : index
    %29 = vector.load %arg6[%c0_22, %c1_23, %c0_24, %c0_25] : memref<1x2x8x8xf32, #tpu.memory_space<vmem>>, vector<1x1x8x8xf32>
    %30 = vector.shape_cast %29 : vector<1x1x8x8xf32> to vector<8x8xf32>
    %31 = vector.shape_cast %28 : vector<8x8xf32> to vector<1x1x8x8xf32>
    tpu.vector_store %arg6[%c0_22, %c1_23, %c0_24, %c0_25], %31 {strides = array<i32>} : memref<1x2x8x8xf32, #tpu.memory_space<vmem>>, vector<1x1x8x8xf32>,
    %32 = vector.extract_strided_slice %11 {offsets = [0, 8], sizes = [8, 8], strides = [1, 1]} : vector<8x16xf32> to vector<8x8xf32>
    %c0_26 = arith.constant 0 : index
    %c1_27 = arith.constant 1 : index
    %c0_28 = arith.constant 0 : index
    %c0_29 = arith.constant 0 : index
    %33 = vector.load %arg7[%c0_26, %c1_27, %c0_28, %c0_29] : memref<1x2x8x8xf32, #tpu.memory_space<vmem>>, vector<1x1x8x8xf32>
    %34 = vector.shape_cast %33 : vector<1x1x8x8xf32> to vector<8x8xf32>
    %35 = vector.shape_cast %32 : vector<8x8xf32> to vector<1x1x8x8xf32>
    tpu.vector_store %arg7[%c0_26, %c1_27, %c0_28, %c0_29], %35 {strides = array<i32>} : memref<1x2x8x8xf32, #tpu.memory_space<vmem>>, vector<1x1x8x8xf32>,
    return
  }
  func.func @transform_0(%arg0: i32, %arg1: i32) -> (i32, i32, i32) {
    %c0_i32 = arith.constant 0 : i32
    %c0_i32_0 = arith.constant 0 : i32
    return %arg0, %arg1, %c0_i32 : i32, i32, i32
  }
  func.func @transform_1(%arg0: i32, %arg1: i32) -> (i32, i32) {
    %c0_i32 = arith.constant 0 : i32
    %c0_i32_0 = arith.constant 0 : i32
    %c0_i32_1 = arith.constant 0 : i32
    return %c0_i32, %c0_i32_0 : i32, i32
  }
  func.func @transform_2(%arg0: i32, %arg1: i32) -> (i32, i32) {
    %c0_i32 = arith.constant 0 : i32
    %c0_i32_0 = arith.constant 0 : i32
    %c0_i32_1 = arith.constant 0 : i32
    return %c0_i32, %c0_i32_0 : i32, i32
  }
  func.func @transform_3(%arg0: i32, %arg1: i32) -> (i32, i32, i32, i32) {
    %c0_i32 = arith.constant 0 : i32
    %c0_i32_0 = arith.constant 0 : i32
    %c0_i32_1 = arith.constant 0 : i32
    return %arg0, %c0_i32, %arg1, %c0_i32_0 : i32, i32, i32, i32
  }
  func.func @transform_4(%arg0: i32, %arg1: i32) -> (i32, i32, i32, i32) {
    %c0_i32 = arith.constant 0 : i32
    %c0_i32_0 = arith.constant 0 : i32
    %c0_i32_1 = arith.constant 0 : i32
    return %arg0, %c0_i32, %arg1, %c0_i32_0 : i32, i32, i32, i32
  }
  func.func @transform_5(%arg0: i32, %arg1: i32) -> (i32, i32, i32, i32) {
    %c0_i32 = arith.constant 0 : i32
    %c0_i32_0 = arith.constant 0 : i32
    %c0_i32_1 = arith.constant 0 : i32
    return %arg0, %c0_i32, %arg1, %c0_i32_0 : i32, i32, i32, i32
  }
}

</mosaic_0001>

<bundles_post_ra>
// kernel: tpu_custom_call.1
= control target key start
LH: loop header
LB: loop body
LE: loop exit
PB: predicated region body
PF: predicated region fallthrough
CT: control target
= control target key end

     0   :  { %s1273_s0 = inlined_call_operand.hbm [shape: f32[2,8,32], index: 0, kind: input, shape index: {}]   ;;  %s1274_s1 = inlined_call_operand.hbm [shape: f32[32,64], index: 1, kind: input, shape index: {}]   ;;  %s1275_s2 = inlined_call_operand.vmem [shape: f32[1,64], index: 2, kind: input, shape index: {}]   ;;  %s1276_s3 = inlined_call_operand.hbm [shape: f32[2,2,8,16], index: 3, kind: output, shape index: {0}]   ;;  %s1277_s4 = inlined_call_operand.hbm [shape: f32[2,2,8,8], index: 4, kind: output, shape index: {1}]   ;;  %s1278_s5 = inlined_call_operand.hbm [shape: f32[2,2,8,8], index: 5, kind: output, shape index: {2}]  }
   0x1   :  { %1282 = sst [smem:[#allocation16_spill]] %s1273_s0 }
   0x2   :  { %1283 = sst [smem:[#allocation17_spill]] %s1274_s1 }
   0x3   :  { %11 = vsyncpa [#allocation3], 0 }
   0x4   :  { %13 = vsyncpa [#allocation3 + $0x1], 0 }
   0x5   :  { %14 = vsyncpa [#allocation6], 0 }
   0x6   :  { %15 = vsyncpa [#allocation4], 0 }
   0x7   :  { %17 = vsyncpa [#allocation4 + $0x1], 0 }
   0x8   :  { %18 = vsyncpa [#allocation9], 0 }
   0x9   :  { %20 = vsyncpa [#allocation9 + $0x1], 0  ;;  %s1011_s18 = smov 0   ;;  %s1013_s19 = smov 0  }
   0xa   :  { %s1015_s20 = smov 0   ;;  %s1017_s21 = smov 0  }
   0xb   :  { %s1019_s22 = smov 0   ;;  %s1021_s23 = smov 0  }
   0xc LB: > { %s1042_s24 = sadd.s32 4294967295, %s963_s23   ;;  %s1279_s25 = sadd.s32 4294967294, %s963_s23   ;;  %s963_s23 = sphi %s1021_s23, %s26_s23   ;;  %s959_s22 = sphi %s1019_s22, %s1305_s22   ;;  %s955_s21 = sphi %s1017_s21, %s1304_s21   ;;  %s951_s20 = sphi %s1015_s20, %s1303_s20   ;;  %s947_s19 = sphi %s1013_s19, %s1302_s19   ;;  %s943_s18 = sphi %s1011_s18, %s1301_s18  }
   0xd   : > { %p60_p0 = scmp.ne.s32.totalorder %s947_s19, %s943_s18  ;;  %p1281_p1 = scmp.eq.s32.totalorder %s1042_s24, 0 }
   0xe   : > { %p134_p3 = scmp.eq.s32.totalorder %s1279_s25, 1  ;;  %p629_p5 = scmp.ge.s32.totalorder %s963_s23, 1 }
   0xf   : > { %p1053_p4 = por %p1281_p1, %p60_p0  ;;  %p197_p7 = scmp.lt.s32.totalorder %s963_s23, 3 }
  0x10   : > { %p1058_p6 = por %p134_p3, %p60_p0  ;;  %s965_s29 = smov [#allocation5]  }
  0x11   : > { %p1063_p8 = pnand %p629_p5, %p197_p7  ;;  %s209_s30 = sshll.u32 %s965_s29, 4  ;;  %s210_s30 = int_to_ptr.vmem [resolvable:$true] %s209_s30 }
  0x12   : > { %s1285_s27 = scalar_select %p1058_p6, 1, 0 }
  0x13   : > { %p687_p9 = pneg %p1063_p8  ;;  %s38_s7 = sadd.s32 1, %s959_s22 }
  0x14   : > { %s780_s8 = scalar_lea.vmem %s210_s30, 512  ;;  %p788_p5 = scmp.lt.s32.totalorder %s210_s30, %s210_s30 }
  0x15   : > { %p1072_p11 = pnand %p687_p9, %p1281_p1  ;;  %p781_p13 = scmp.ne.s32.totalorder %s210_s30, %s780_s8 }
  0x16   : > { %p789_p7 = scmp.lt.s32.totalorder %s780_s8, %s780_s8 }
  0x17   : > { %p771_p12 = pneg %p1072_p11 }
  0x18   : > { %p790_p2 = por %p789_p7, %p788_p5 }
  0x19   : > { %p783_p0 = pnand %p781_p13, %p771_p12 }
  0x1b   : > { %p784_p3 = pneg %p783_p0 }
  0x1d   : > { %p791_p6 = pnand %p790_p2, %p784_p3 }
  0x1f   : > { %794 = shalt.err (!%p791_p6)
}
  0x20   : > { %s966_s9 = smov 128   ;;  %s967_s10 = smov 8  }
  0x21   : > { %s1288_s1 = sld [smem:[#allocation17_spill]]  ;;  %p40_p2 = scmp.ge.s32.totalorder %s38_s7, 2 }
  0x22   : > { %s47_s13 = sadd.s32 1, %s951_s20  ;;  %p54_p6 = scmp.ne.s32.totalorder %s951_s20, %s947_s19 }
  0x23   : > { %p55_p9 = scmp.eq.s32.totalorder %s963_s23, 0  ;;  %s1307_s7 = smov (%p40_p2, %s38_s7), 0 }
  0x24   : > { %1289 = sst [smem:[#allocation15_spill]] %s1307_s7  ;;  %p1291_p13 = scmp.eq.s32.totalorder %s1042_s24, 1 }
  0x25   : > { %p1090_p12 = por %p55_p9, %p54_p6  ;;  %s42_s16 = ssub.s32 %s959_s22, %s1307_s7 }
  0x26   : > { %p1096_p0 = por %p1291_p13, %p54_p6  ;;  %p706_p3 = scmp.lt.s32.totalorder %s963_s23, 2 }
  0x27   : > { %690 = dma.hbm_to_vmem [thread:$0]  (!%p1072_p11), %s1288_s1, 512, %s210_s30, [#allocation6], %s966_s9, %s966_s9, %s967_s10  }
  0x28   : > { %p45_p11 = scmp.eq.s32.totalorder %s42_s16, 0  ;;  %s226_s17 = sand.u32 1, %s951_s20  }
  0x29   : > { %s632_s29 = sshll.u32 %s226_s17, 3  ;;  %s633_s6 = sshll.u32 %s959_s22, 7 }
  0x2a   : > { %s1105_s30 = scalar_select %p45_p11, %s951_s20, %s47_s13  }
  0x2b   : > { %s1293_s0 = sld [smem:[#allocation16_spill]]  ;;  %s230_s11 = scalar_lea.vmem [#allocation2], %s632_s29 }
  0x2c   : > { %s238_s12 = sshll.u32 %s230_s11, 4  ;;  %p1113_p5 = pnand %p706_p3, %p1090_p12  ;;  %s239_s12 = int_to_ptr.vmem [resolvable:$true] %s238_s12 }
  0x2d   : > { %s227_s1 = scalar_lea.sflag [#allocation3], %s226_s17  ;;  %s808_s16 = scalar_lea.vmem %s239_s12, 128 }
  0x2e   : > { %p797_p7 = pneg %p1113_p5  ;;  %p809_p2 = scmp.ne.s32.totalorder %s239_s12, %s808_s16 }
  0x2f   : > { %s968_s13 = smov [#allocation2]  }
  0x30   : > { %p811_p6 = pnand %p809_p2, %p797_p7  ;;  %s813_s7 = sshll.u32 %s968_s13, 4  ;;  %s814_s7 = int_to_ptr.vmem [resolvable:$false] %s813_s7 }
  0x31   : > { %s236_s10 = scalar_lea.hbm %s1293_s0, %s633_s6  ;;  %s815_s6 = scalar_lea.vmem %s814_s7, 256 }
  0x32   : > { %p812_p9 = pneg %p811_p6  ;;  %p816_p13 = scmp.lt.s32.totalorder %s239_s12, %s814_s7 }
  0x33   : > { %p817_p11 = scmp.lt.s32.totalorder %s815_s6, %s808_s16 }
  0x35   : > { %p818_p10 = por %p817_p11, %p816_p13 }
  0x37   : > { %p819_p1 = pnand %p818_p10, %p812_p9 }
  0x39   : > { %822 = shalt.err (!%p819_p1)
}
  0x3a   : > { %694 = dma.hbm_to_vmem [thread:$0]  (!%p1113_p5), %s236_s10, 128, %s239_s12, %s227_s1  }
  0x3b   : > { %247 = sbr.rel (%p1063_p8) target bundleno = 449 (0x1c1), region = 32  ;;  %s1124_s14 = sand.u32 (!%p1063_p8), 1, %s947_s19  }
  0x3c   : > { %s635_s17 = sshll.u32 (!%p1063_p8), %s1124_s14, 3  ;;  %s250_s29 = scalar_lea.sflag (!%p1063_p8), [#allocation3], %s1124_s14 }
  0x3d   : > { %s253_s8 = scalar_lea.vmem (!%p1063_p8), [#allocation2], %s635_s17 }
  0x40   : > { %926 = dma.done.wait (%p1053_p4), %s250_s29, 128  }
  0x41   : > { %928 = vsyncadd (%p1053_p4), %s250_s29, 4294967168  ;;  %p1295_p1 = scmp.eq.s32.totalorder %s1042_s24, 0 }
  0x43   : > { %930 = dma.done.wait (%p1295_p1), [#allocation6], 512   ;;  %p1296_p10 = pmov %p1295_p1 }
  0x44   : > { %v969_v0 = vmov 0.0   ;;  %vm970_vm0 = vmmov 0   ;;  %v298_v1 = vld [vmem:[#allocation5 + $0x18] sm:$0xff]  ;;  %v297_v2 = vld [vmem:[#allocation5 + $0x10] sm:$0xff]  ;;  %v296_v3 = vld [vmem:[#allocation5 + $0x8] sm:$0xff]  ;;  %vm306_vm1 = vcmask 261120  }
  0x45   : > { %932 = vsyncadd (%p1296_p10), [#allocation6], 4294966784  ;;  %664 = vmatprep.subr.mxu0 %v969_v0  ;;  %672 = vmatprep.mubr.msk.f32.mxu0 %vm970_vm0, %v969_v0  ;;  %v295_v4 = vld [vmem:[#allocation5] sm:$0xff]  ;;  %v294_v5 = vld [vmem:[%s253_s8] sm:$0xff]  ;;  %s637_s26 = sshll.u32 %s1124_s14, 4  ;;  %vm381_vm2 = vcmask 130048  }
  0x46   : > { %665 = vmatpush3.msra.mxu0 %v298_v1  ;;  %v640_v6 = vld [vmem:[%s1275_s2] ss:$0 sm:$0xff]  ;;  %s971_s28 = smov 80   ;;  %s972_s7 = smov 96   ;;  %vm387_vm3 = vcmask 64512  }
  0x47   : > { %666 = vmatprep.subr.mxu0 %v969_v0  ;;  %s279_s9 = scalar_lea.vmem [#allocation7], %s637_s26  ;;  %s973_s10 = smov 88  }
  0x48   : > { %667 = vmatpush3.msra.mxu0 %v297_v2  ;;  %s974_s11 = smov 112   ;;  %s975_s12 = smov 72  }
  0x49   : > { %668 = vmatprep.subr.mxu0 %v969_v0  ;;  %s286_s16 = scalar_lea.vmem [#allocation8], %s637_s26  ;;  %s434_s6 = sshll.u32 %s279_s9, 4  ;;  %s1151_s6 = int_to_ptr.vmem [resolvable:$true] %s434_s6 }
  0x4a   : > { %669 = vmatpush3.msra.mxu0 %v296_v3  ;;  %s451_s13 = sshll.u32 %s286_s16, 4  ;;  %s414_s17 = sand.u32 1, %s1042_s24   ;;  %s1148_s13 = int_to_ptr.vmem [resolvable:$true] %s451_s13 }
  0x4b   : > { %670 = vmatprep.subr.mxu0 %v969_v0  ;;  %s1142_s29 = scalar_lea.vmem [#allocation10], %s637_s26  ;;  %s656_s1 = sshll.u32 %s955_s21, 8 }
  0x4c   : > { %671 = vmatpush3.msra.mxu0 %v295_v4  ;;  %s468_s8 = sshll.u32 %s1142_s29, 4  ;;  %s1156_s26 = scalar_lea.hbm %s1277_s4, %s656_s1  ;;  %s1163_s8 = int_to_ptr.vmem [resolvable:$true] %s468_s8 }
  0x4d   : > { %673 = vmatmul.mubr.msk.f32.vlgmr.msra.gmra.mxu0 %vm306_vm1, %v294_v5  ;;  %s1172_s24 = scalar_lea.sflag [#allocation9], %s414_s17  ;;  %s823_s25 = scalar_lea.vmem %s1148_s13, 256 }
  0x4e   : > { %p824_p4 = scmp.ne.s32.totalorder %s1148_s13, %s823_s25  ;;  %s976_s21 = smov [#allocation8]  }
  0x50   : > { %p825_p8 = pnand %p824_p4, %p1096_p0 }
  0x52   : > { %p826_p12 = pneg %p825_p8 }
 0x10d   : > { %v376_v7 = vpop.f32.mrf.mxu0 }
 0x10e   : > { %v377_v8 = vadd.f32 %v640_v6, %v376_v7 }
 0x10f   : > { %v674_v9 = vpop.f32.mrf.mxu0 }
 0x110   : > { %389 = vrot.lane.b32.xlu1 %v377_v8, %s971_s28  ;;  %384 = vrot.lane.b32.xlu0 %v377_v8, %s972_s7  ;;  %v380_v10 = vmul.f32 0.35355338, %v377_v8  ;;  %s1161_s7 = scalar_lea.hbm %s1276_s3, %s656_s1  ;;  %s827_s28 = sshll.u32 %s976_s21, 4  ;;  %s828_s28 = int_to_ptr.vmem [resolvable:$false] %s827_s28 }
 0x111   : > { %s829_s0 = scalar_lea.vmem %s828_s28, 512  ;;  %p830_p3 = scmp.lt.s32.totalorder %s1148_s13, %s828_s28 }
 0x112   : > { %382 = vst.msk [vmem:[%s279_s9] sm:$0xff] %vm381_vm2, %v380_v10  ;;  %p831_p5 = scmp.lt.s32.totalorder %s829_s0, %s823_s25 }
 0x114   : > { %399 = vrot.lane.b32.xlu0 %v377_v8, %s973_s10  ;;  %394 = vrot.lane.b32.xlu1 %v380_v10, %s974_s11  ;;  %p832_p7 = por %p831_p5, %p830_p3 }
 0x116   : > { %p833_p2 = pnand %p832_p7, %p826_p12 }
 0x118   : > { %404 = vrot.lane.b32.xlu0 %v377_v8, %s975_s12  ;;  %s1170_s12 = scalar_lea.hbm %s1278_s5, %s656_s1 }
 0x182   : > { %v390_v11 = vpop.permute.xlu1 %389  ;;  %v385_v12 = vpop.permute.xlu0 %384 }
 0x183   : > { %392 = vst.msk [vmem:[%s1142_s29] sm:$0xff] %vm387_vm3, %v390_v11  ;;  %388 = vst.msk [vmem:[%s286_s16] sm:$0xff] %vm387_vm3, %v385_v12 }
 0x186   : > { %v400_v13 = vpop.permute.xlu0 %399  ;;  %v395_v14 = vpop.permute.xlu1 %394 }
 0x187   : > { %643 = vst.msk [vmem:[%s286_s16 + $0x8] sm:$0xff] %vm387_vm3, %v400_v13 }
 0x188   : > { %642 = vst.msk [vmem:[%s279_s9 + $0x8] sm:$0xff] %vm381_vm2, %v395_v14 }
 0x189   : > { %836 = shalt.err (!%p833_p2)
}
 0x18a   : > { %s837_s9 = scalar_lea.hbm %s1156_s26, 256  ;;  %s841_s1 = scalar_lea.hbm %s1277_s4, 512 }
 0x18b   : > { %p838_p6 = scmp.ne.s32.totalorder %s1156_s26, %s837_s9  ;;  %p842_p11 = scmp.lt.s32.totalorder %s1156_s26, %s1277_s4 }
 0x18c   : > { %p843_p1 = scmp.lt.s32.totalorder %s841_s1, %s837_s9 }
 0x18d   : > { %p839_p9 = pnand %p838_p6, %p1096_p0 }
 0x18e   : > { %p844_p10 = por %p843_p1, %p842_p11 }
 0x18f   : > { %p840_p13 = pneg %p839_p9 }
 0x191   : > { %p845_p4 = pnand %p844_p10, %p840_p13 }
 0x193   : > { %848 = shalt.err (!%p845_p4)
}
 0x194   : > { %s977_s0 = smov 128   ;;  %s978_s25 = smov 8  }
 0x195   : > { %682 = dma.vmem_to_hbm [thread:$0]  (%p1096_p0), %s1148_s13, 256, %s1156_s26, %s1172_s24, %s977_s0, %s977_s0, %s978_s25  }
 0x196   : > { %s410_s21 = scalar_lea.sflag [#allocation4], %s1124_s14  ;;  %s849_s28 = scalar_lea.vmem %s1151_s6, 256 }
 0x197   : > { %p850_p8 = scmp.ne.s32.totalorder %s1151_s6, %s849_s28  ;;  %s979_s9 = smov [#allocation7]  }
 0x198   : > { %s853_s16 = sshll.u32 %s979_s9, 4  ;;  %s854_s16 = int_to_ptr.vmem [resolvable:$false] %s853_s16 }
 0x199   : > { %p851_p12 = pnand %p850_p8, %p1096_p0  ;;  %s855_s17 = scalar_lea.vmem %s854_s16, 512 }
 0x19a   : > { %p856_p5 = scmp.lt.s32.totalorder %s1151_s6, %s854_s16  ;;  %p857_p7 = scmp.lt.s32.totalorder %s855_s17, %s849_s28 }
 0x19b   : > { %p852_p3 = pneg %p851_p12 }
 0x19c   : > { %p858_p2 = por %p857_p7, %p856_p5 }
 0x19e   : > { %p859_p6 = pnand %p858_p2, %p852_p3 }
 0x1a0   : > { %862 = shalt.err (!%p859_p6)
}
 0x1a1   : > { %s863_s13 = scalar_lea.hbm %s1161_s7, 256  ;;  %s867_s1 = scalar_lea.hbm %s1276_s3, 512 }
 0x1a2   : > { %p864_p9 = scmp.ne.s32.totalorder %s1161_s7, %s863_s13  ;;  %p868_p1 = scmp.lt.s32.totalorder %s1161_s7, %s1276_s3 }
 0x1a3   : > { %p869_p10 = scmp.lt.s32.totalorder %s867_s1, %s863_s13 }
 0x1a4   : > { %p865_p13 = pnand %p864_p9, %p1096_p0 }
 0x1a5   : > { %p870_p4 = por %p869_p10, %p868_p1 }
 0x1a6   : > { %p866_p11 = pneg %p865_p13 }
 0x1a8   : > { %p871_p8 = pnand %p870_p4, %p866_p11 }
 0x1aa   : > { %874 = shalt.err (!%p871_p8)
}
 0x1ab   : > { %681 = dma.vmem_to_hbm [thread:$0]  (%p1096_p0), %s1151_s6, 256, %s1161_s7, %s410_s21, %s977_s0, %s977_s0, %s978_s25   ;;  %v405_v15 = vpop.permute.xlu0 %404 }
 0x1ac   : > { %644 = vst.msk [vmem:[%s1142_s29 + $0x8] sm:$0xff] %vm387_vm3, %v405_v15  ;;  %s875_s28 = scalar_lea.vmem %s1163_s8, 256  ;;  %s980_s9 = smov [#allocation10]  }
 0x1ad   : > { %p876_p12 = scmp.ne.s32.totalorder %s1163_s8, %s875_s28  ;;  %s879_s16 = sshll.u32 %s980_s9, 4  ;;  %s880_s16 = int_to_ptr.vmem [resolvable:$false] %s879_s16 }
 0x1ae   : > { %s881_s17 = scalar_lea.vmem %s880_s16, 512  ;;  %p882_p7 = scmp.lt.s32.totalorder %s1163_s8, %s880_s16 }
 0x1af   : > { %p877_p3 = pnand %p876_p12, %p1096_p0  ;;  %p883_p2 = scmp.lt.s32.totalorder %s881_s17, %s875_s28 }
 0x1b1   : > { %p878_p5 = pneg %p877_p3  ;;  %p884_p6 = por %p883_p2, %p882_p7 }
 0x1b3   : > { %p885_p9 = pnand %p884_p6, %p878_p5 }
 0x1b5   : > { %888 = shalt.err (!%p885_p9)
}
 0x1b6   : > { %s889_s6 = scalar_lea.hbm %s1170_s12, 256  ;;  %s893_s21 = scalar_lea.hbm %s1278_s5, 512 }
 0x1b7   : > { %p890_p13 = scmp.ne.s32.totalorder %s1170_s12, %s889_s6  ;;  %p894_p10 = scmp.lt.s32.totalorder %s1170_s12, %s1278_s5 }
 0x1b8   : > { %p895_p4 = scmp.lt.s32.totalorder %s893_s21, %s889_s6 }
 0x1b9   : > { %p891_p11 = pnand %p890_p13, %p1096_p0 }
 0x1ba   : > { %p896_p8 = por %p895_p4, %p894_p10 }
 0x1bb   : > { %p892_p1 = pneg %p891_p11 }
 0x1bd   : > { %p897_p12 = pnand %p896_p8, %p892_p1 }
 0x1bf   : > { %900 = shalt.err (!%p897_p12)
}
 0x1c0   : > { %683 = dma.vmem_to_hbm [thread:$0]  (%p1096_p0), %s1163_s8, 256, %s1170_s12, %s1172_s24, %s977_s0, %s977_s0, %s978_s25  }
 0x1c1 PF: > { %s483_s26 = sand.u32 1, %s943_s18   ;;  %p1297_p3 = scmp.ne.s32.totalorder %s1285_s27, 0 }
 0x1c2   : > { %p1298_p5 = scmp.ge.s32.totalorder %s963_s23, 2  ;;  %s484_s1 = scalar_lea.sflag [#allocation4], %s483_s26 }
 0x1c4   : > { %p696_p7 = pnand %p1298_p5, %p1297_p3 }
 0x1c6   : > { %p697_p2 = pneg %p696_p7 }
 0x1c8   : > { %934 = dma.done.wait (%p697_p2), %s484_s1, 256  }
 0x1c9   : > { %936 = vsyncadd (%p697_p2), %s484_s1, 4294967040  ;;  %s1299_s15 = sadd.s32 4294967294, %s963_s23  }
 0x1ca   : > { %s492_s10 = sand.u32 1, %s1299_s15  }
 0x1cb   : > { %s493_s11 = scalar_lea.sflag [#allocation9], %s492_s10 }
 0x1cc   : > { %938 = dma.done.wait (%p697_p2), %s493_s11, 512  }
 0x1cd   : > { %940 = vsyncadd (%p697_p2), %s493_s11, 4294966784  ;;  %s26_s23 = sadd.s32 1, %s963_s23   ;;  %s1300_s27 = sld [smem:[#allocation15_spill]] }
 0x1ce   : > { %p23_p0 = scmp.ge.s32.totalorder %s26_s23, 4   ;;  %s1301_s18 = smov %s947_s19 }
 0x1cf   : > { %s1302_s19 = smov %s951_s20  ;;  %s1303_s20 = smov %s1105_s30 }
 0x1d0   : > { %s1304_s21 = smov %s959_s22  ;;  %25 = sbr.rel (!%p23_p0) target bundleno = 12 (0xc), region = 116 }
 0x1d3   : > { %s1305_s22 = smov %s1300_s27 }
 0x1d5   :  { %507 = vsyncpa [#allocation3], 1 }
 0x1d6   :  { %509 = vsyncpa [#allocation3 + $0x1], 1 }
 0x1d7   :  { %510 = vsyncpa [#allocation6], 1 }
 0x1d8   :  { %511 = vsyncpa [#allocation4], 1 }
 0x1d9   :  { %513 = vsyncpa [#allocation4 + $0x1], 1 }
 0x1da   :  { %514 = vsyncpa [#allocation9], 1 }
 0x1db   :  { %516 = vsyncpa [#allocation9 + $0x1], 1 }

</bundles_post_ra>
